<compile_context>
chip_gen: v6e
topology: v6e:2x2x1
jax: 0.10.0
libtpu: 0.0.40
codegen_flags: <defaults>
</compile_context>

<pallas_src>
import functools

import numpy as np
import jax
import jax.numpy as jnp
from jax import lax
from jax.experimental import pallas as pl
from jax.experimental.pallas import tpu as pltpu

_LANES = 128  # lane-dense intermediate feature width


# ----------------------------------------------------------------------------
# m-sequence generation (replicates scipy.signal.max_len_seq's LFSR algorithm)
# ----------------------------------------------------------------------------
_MLS_TAPS = {2: [1], 3: [2], 4: [3], 5: [3], 6: [5], 7: [6],
             8: [7, 6, 1], 9: [5], 10: [7], 11: [9]}


def max_len_seq(nbits):
    taps = np.unique(np.array(_MLS_TAPS[nbits], dtype=np.intp))[::-1]
    state = np.ones(nbits, dtype=np.int8)
    length = (1 << nbits) - 1
    seq = np.empty(length, dtype=np.int8)
    idx = 0
    for i in range(length):
        feedback = state[idx]
        seq[i] = feedback
        for t in taps:
            feedback ^= state[(t + idx) % nbits]
        state[idx] = feedback
        idx = (idx + 1) % nbits
    return seq, np.roll(state, -idx)


def seq_matrix(period, rotate):
    m_seq = np.array(max_len_seq(period)[0])
    mat = np.copy(m_seq)
    for _ in range(rotate - 1):
        m_seq = np.roll(m_seq, 1)
        mat = np.vstack((mat, m_seq))
    return mat.astype(np.float32)  # (rotate, 2**period - 1) = PyTorch (out, in)


# ----------------------------------------------------------------------------
# Fused Pallas kernel: 4x [binarized-linear -> train-mode BN -> optional ReLU]
# ----------------------------------------------------------------------------
def _fused_mlp_kernel(x_ref, w1_ref, w234_ref, gb_ref, o_ref, *, eps):
    """Weights are pre-binarized, pre-transposed and zero-padded to 128 lanes,
    so padded feature columns stay exactly 0 through every layer (zero weight
    rows for the padded K positions contribute nothing to the next matmul)."""
    gb = gb_ref[...]  # (8, 128): rows 0..3 = gamma1..4, rows 4..7 = beta1..4

    def layer(h, w, g, b, relu):
        y = jnp.dot(h, w, preferred_element_type=jnp.float32)     # MXU, (B, 128)
        # BatchNorm1d training mode: batch mean, biased variance, one pass.
        mean = jnp.mean(y, axis=0, keepdims=True)                 # (1, 128)
        var = jnp.mean(y * y, axis=0, keepdims=True) - mean * mean
        scale = g * lax.rsqrt(var + eps)                          # EUP rsqrt
        shift = b - mean * scale
        out = y * scale + shift                                   # single FMA
        if relu:
            out = jnp.maximum(out, 0.0)
        return out

    h = x_ref[...]                                                # (B, K) f32
    h = layer(h, w1_ref[...], gb[0:1, :], gb[4:5, :], True)
    h = layer(h, w234_ref[0], gb[1:2, :], gb[5:6, :], True)
    h = layer(h, w234_ref[1], gb[2:3, :], gb[6:7, :], True)
    h = layer(h, w234_ref[2], gb[3:4, :], gb[7:8, :], False)
    # Lane-dense (B, 128) store (unmasked vst); wrapper slices to out_features.
    o_ref[...] = h.astype(o_ref.dtype)


# ----------------------------------------------------------------------------
# Host-side parameter preparation (done once at init, not per forward)
# ----------------------------------------------------------------------------
def _prep_weight(w, k_pad, n_pad):
    """PyTorch (out,in) weight -> binarized, transposed (in,out), zero-padded."""
    # TODO(synk): BinaryLinear's exact binarize rule for w==0 is unknown here;
    # jnp.sign (0 -> 0) is used so the frozen 0/1 m-sequence matrix keeps its
    # structure (a ">=0 -> +1" rule would collapse it to all-ones).
    wb = jnp.sign(jnp.asarray(w, jnp.float32))
    wt = wb.T
    k, n = wt.shape
    return jnp.pad(wt, ((0, k_pad - k), (0, n_pad - n)))


def _pad_vec(v, n):
    v = jnp.asarray(v, jnp.float32)
    return jnp.pad(v, (0, n - v.shape[0]))


class MLPBinaryConnectM1:
    def __init__(self, in_features, out_features, num_units=32, eps=1e-4,
                 key=jax.random.PRNGKey(0)):
        self.in_features = in_features
        self.out_features = out_features
        self.eps = eps
        # Reference model: num_units=2048, m-seq order 11 (2**11-1 = 2047).
        # At demo scale the order is derived as log2(num_units).
        period = int(np.log2(num_units))
        assert (1 << period) == num_units, "num_units must be a power of 2"
        assert num_units <= _LANES and out_features <= _LANES

        k1, k2, k3 = jax.random.split(key, 3)
        scale = 0.1
        # PyTorch nn.Linear layout: (out_features, in_features)
        w1 = scale * jax.random.normal(k1, (num_units, in_features), jnp.float32)
        w2 = scale * jax.random.normal(k2, (num_units, num_units), jnp.float32)
        w3 = scale * jax.random.normal(k3, (num_units - 1, num_units), jnp.float32)
        wm = jnp.asarray(seq_matrix(period, out_features))  # (out, num_units-1)

        # Pre-binarized, pre-transposed, lane-dense padded kernel weights.
        self.w1p = _prep_weight(w1, in_features, _LANES)     # (K, 128)
        w2p = _prep_weight(w2, _LANES, _LANES)               # (128, 128)
        w3p = _prep_weight(w3, _LANES, _LANES)               # (128, 128)
        w4p = _prep_weight(wm, _LANES, _LANES)               # (128, 128)
        # One stacked operand -> a single DMA for the three square weights.
        self.w234p = jnp.stack([w2p, w3p, w4p], axis=0)      # (3, 128, 128)

        # BatchNorm affine params (batch_affine=True): gamma=1, beta=0 at init.
        g = [jnp.ones((num_units,), jnp.float32),
             jnp.ones((num_units,), jnp.float32),
             jnp.ones((num_units - 1,), jnp.float32),
             jnp.ones((out_features,), jnp.float32)]
        b = [jnp.zeros_like(v) for v in g]
        # One (8,128) tile for all BN params: rows 0..3 gammas, rows 4..7 betas.
        self.gb = jnp.stack([_pad_vec(v, _LANES) for v in g + b], axis=0)

        # Unpadded params for the pure-JAX reference check.
        self._ref_w = [jnp.sign(w1).T, jnp.sign(w2).T, jnp.sign(w3).T, jnp.sign(wm).T]
        self._ref_g = g
        self._ref_b = b

    def __call__(self, x):
        x = jnp.reshape(jnp.asarray(x, jnp.float32), (-1, self.in_features))
        B, K = x.shape
        out_padded = pl.pallas_call(
            functools.partial(_fused_mlp_kernel, eps=self.eps),
            out_shape=jax.ShapeDtypeStruct((B, _LANES), jnp.float32),
            grid=(1,),
            in_specs=[
                pl.BlockSpec((B, K), lambda i: (0, 0)),
                pl.BlockSpec(self.w1p.shape, lambda i: (0, 0)),
                pl.BlockSpec(self.w234p.shape, lambda i: (0, 0, 0)),
                pl.BlockSpec(self.gb.shape, lambda i: (0, 0)),
            ],
            out_specs=pl.BlockSpec((B, _LANES), lambda i: (0, 0)),
            compiler_params=pltpu.CompilerParams(
                dimension_semantics=("arbitrary",)),
        )(x, self.w1p, self.w234p, self.gb)
        # Narrow slice done outside the kernel (layout plumbing, not compute).
        return out_padded[:, :self.out_features]

    def reference(self, x):
        """Pure-JAX (non-Pallas) forward used for correctness checking."""
        h = jnp.reshape(jnp.asarray(x, jnp.float32), (-1, self.in_features))
        for i in range(4):
            w, g, b = self._ref_w[i], self._ref_g[i], self._ref_b[i]
            y = jnp.dot(h, w, preferred_element_type=jnp.float32)
            mean = jnp.mean(y, axis=0, keepdims=True)
            var = jnp.mean(jnp.square(y - mean), axis=0, keepdims=True)
            h = (y - mean) * lax.rsqrt(var + self.eps) * g[None, :] + b[None, :]
            if i < 3:
                h = jnp.maximum(h, 0.0)
        return h


if __name__ == "__main__":
    key = jax.random.PRNGKey(0)
    kx, kp = jax.random.split(key)

    # Small MNIST-like setup: batch=8, 1x8x8 images -> in_features=64,
    # num_units=32 (so num_units-1 = 31 = 2^5-1 m-sequence), 10 classes.
    B, C, H, W = 8, 1, 8, 8
    in_features = C * H * W
    out_features = 10

    x = jax.random.normal(kx, (B, C, H, W), jnp.float32)
    model = MLPBinaryConnectM1(in_features, out_features, num_units=32, key=kp)

    y = model(x)
    jax.block_until_ready(y)
    assert y.shape == (B, out_features)
    assert bool(jnp.all(jnp.isfinite(y)))

    # Cross-check the fused kernel against a pure-JAX reference (loose tolerance
    # to allow for MXU/XLA f32-via-bf16 matmul precision differences).
    y_ref = model.reference(x)
    np.testing.assert_allclose(np.asarray(y), np.asarray(y_ref),
                               rtol=5e-2, atol=5e-2)

    print("KERNEL_OK")
</pallas_src>

<mosaic_0001>
module attributes {stable_mosaic.version = 11 : i64} {
  func.func @_fused_mlp_kernel(%arg0: i32, %arg1: memref<8x64xf32, #tpu.memory_space<vmem>>, %arg2: memref<64x128xf32, #tpu.memory_space<vmem>>, %arg3: memref<3x128x128xf32, #tpu.memory_space<vmem>>, %arg4: memref<8x128xf32, #tpu.memory_space<vmem>>, %arg5: memref<8x128xf32, #tpu.memory_space<vmem>>) attributes {dimension_semantics = [#tpu.dimension_semantics<arbitrary>], iteration_bounds = array<i64: 1>, scalar_prefetch = 0 : i64, scratch_operands = 0 : i64, tpu.core_type = #tpu.core_type<tc>, window_params = [{pipeline_mode = #tpu.pipeline_mode<synchronous>, transform_indices = @transform_0, window_bounds = array<i64: 8, 64>}, {pipeline_mode = #tpu.pipeline_mode<synchronous>, transform_indices = @transform_1, window_bounds = array<i64: 64, 128>}, {pipeline_mode = #tpu.pipeline_mode<synchronous>, transform_indices = @transform_2, window_bounds = array<i64: 3, 128, 128>}, {pipeline_mode = #tpu.pipeline_mode<synchronous>, transform_indices = @transform_3, window_bounds = array<i64: 8, 128>}, {pipeline_mode = #tpu.pipeline_mode<synchronous>, transform_indices = @transform_4, window_bounds = array<i64: 8, 128>}]} {
    %c0 = arith.constant 0 : index
    %c0_0 = arith.constant 0 : index
    %0 = vector.load %arg4[%c0, %c0_0] : memref<8x128xf32, #tpu.memory_space<vmem>>, vector<8x128xf32>
    %c0_1 = arith.constant 0 : index
    %c0_2 = arith.constant 0 : index
    %1 = vector.load %arg1[%c0_1, %c0_2] : memref<8x64xf32, #tpu.memory_space<vmem>>, vector<8x64xf32>
    %c0_3 = arith.constant 0 : index
    %c0_4 = arith.constant 0 : index
    %2 = vector.load %arg2[%c0_3, %c0_4] : memref<64x128xf32, #tpu.memory_space<vmem>>, vector<64x128xf32>
    %3 = vector.extract_strided_slice %0 {offsets = [0, 0], sizes = [1, 128], strides = [1, 1]} : vector<8x128xf32> to vector<1x128xf32>
    %4 = vector.extract_strided_slice %0 {offsets = [4, 0], sizes = [1, 128], strides = [1, 1]} : vector<8x128xf32> to vector<1x128xf32>
    %cst = arith.constant dense<0.000000e+00> : vector<8x128xf32>
    %5 = tpu.matmul %1, %2, %cst {dimension_numbers = #tpu.dot_dimension_numbers<[1], [0], [0], [1], [0, 0, 1, 1], [], []>} : vector<8x64xf32>, vector<64x128xf32>, vector<8x128xf32> -> vector<8x128xf32>
    %cst_5 = arith.constant dense<0.000000e+00> : vector<128xf32>
    %6 = vector.multi_reduction <add>, %5, %cst_5 [0] : vector<8x128xf32> to vector<128xf32>
    %7 = vector.shape_cast %6 : vector<128xf32> to vector<1x128xf32>
    %cst_6 = arith.constant 8.000000e+00 : f32
    %8 = vector.broadcast %cst_6 : f32 to vector<1x128xf32>
    %9 = arith.divf %7, %8 : vector<1x128xf32>
    %10 = arith.mulf %5, %5 : vector<8x128xf32>
    %cst_7 = arith.constant dense<0.000000e+00> : vector<128xf32>
    %11 = vector.multi_reduction <add>, %10, %cst_7 [0] : vector<8x128xf32> to vector<128xf32>
    %12 = vector.shape_cast %11 : vector<128xf32> to vector<1x128xf32>
    %cst_8 = arith.constant 8.000000e+00 : f32
    %13 = vector.broadcast %cst_8 : f32 to vector<1x128xf32>
    %14 = arith.divf %12, %13 : vector<1x128xf32>
    %15 = arith.mulf %9, %9 : vector<1x128xf32>
    %16 = arith.subf %14, %15 : vector<1x128xf32>
    %cst_9 = arith.constant 9.99999974E-5 : f32
    %17 = vector.broadcast %cst_9 : f32 to vector<1x128xf32>
    %18 = arith.addf %16, %17 : vector<1x128xf32>
    %19 = math.rsqrt %18 : vector<1x128xf32>
    %20 = arith.mulf %3, %19 : vector<1x128xf32>
    %21 = arith.mulf %9, %20 : vector<1x128xf32>
    %22 = arith.subf %4, %21 : vector<1x128xf32>
    %23 = vector.broadcast %20 : vector<1x128xf32> to vector<8x128xf32>
    %24 = arith.mulf %5, %23 : vector<8x128xf32>
    %25 = vector.broadcast %22 : vector<1x128xf32> to vector<8x128xf32>
    %26 = arith.addf %24, %25 : vector<8x128xf32>
    %cst_10 = arith.constant 0.000000e+00 : f32
    %27 = vector.broadcast %cst_10 : f32 to vector<8x128xf32>
    %28 = arith.maximumf %26, %27 : vector<8x128xf32>
    %c0_11 = arith.constant 0 : index
    %c0_12 = arith.constant 0 : index
    %c0_13 = arith.constant 0 : index
    %29 = vector.load %arg3[%c0_11, %c0_12, %c0_13] : memref<3x128x128xf32, #tpu.memory_space<vmem>>, vector<1x128x128xf32>
    %30 = vector.shape_cast %29 : vector<1x128x128xf32> to vector<128x128xf32>
    %31 = vector.extract_strided_slice %0 {offsets = [1, 0], sizes = [1, 128], strides = [1, 1]} : vector<8x128xf32> to vector<1x128xf32>
    %32 = vector.extract_strided_slice %0 {offsets = [5, 0], sizes = [1, 128], strides = [1, 1]} : vector<8x128xf32> to vector<1x128xf32>
    %cst_14 = arith.constant dense<0.000000e+00> : vector<8x128xf32>
    %33 = tpu.matmul %28, %30, %cst_14 {dimension_numbers = #tpu.dot_dimension_numbers<[1], [0], [0], [1], [0, 0, 1, 1], [], []>} : vector<8x128xf32>, vector<128x128xf32>, vector<8x128xf32> -> vector<8x128xf32>
    %cst_15 = arith.constant dense<0.000000e+00> : vector<128xf32>
    %34 = vector.multi_reduction <add>, %33, %cst_15 [0] : vector<8x128xf32> to vector<128xf32>
    %35 = vector.shape_cast %34 : vector<128xf32> to vector<1x128xf32>
    %cst_16 = arith.constant 8.000000e+00 : f32
    %36 = vector.broadcast %cst_16 : f32 to vector<1x128xf32>
    %37 = arith.divf %35, %36 : vector<1x128xf32>
    %38 = arith.mulf %33, %33 : vector<8x128xf32>
    %cst_17 = arith.constant dense<0.000000e+00> : vector<128xf32>
    %39 = vector.multi_reduction <add>, %38, %cst_17 [0] : vector<8x128xf32> to vector<128xf32>
    %40 = vector.shape_cast %39 : vector<128xf32> to vector<1x128xf32>
    %cst_18 = arith.constant 8.000000e+00 : f32
    %41 = vector.broadcast %cst_18 : f32 to vector<1x128xf32>
    %42 = arith.divf %40, %41 : vector<1x128xf32>
    %43 = arith.mulf %37, %37 : vector<1x128xf32>
    %44 = arith.subf %42, %43 : vector<1x128xf32>
    %cst_19 = arith.constant 9.99999974E-5 : f32
    %45 = vector.broadcast %cst_19 : f32 to vector<1x128xf32>
    %46 = arith.addf %44, %45 : vector<1x128xf32>
    %47 = math.rsqrt %46 : vector<1x128xf32>
    %48 = arith.mulf %31, %47 : vector<1x128xf32>
    %49 = arith.mulf %37, %48 : vector<1x128xf32>
    %50 = arith.subf %32, %49 : vector<1x128xf32>
    %51 = vector.broadcast %48 : vector<1x128xf32> to vector<8x128xf32>
    %52 = arith.mulf %33, %51 : vector<8x128xf32>
    %53 = vector.broadcast %50 : vector<1x128xf32> to vector<8x128xf32>
    %54 = arith.addf %52, %53 : vector<8x128xf32>
    %cst_20 = arith.constant 0.000000e+00 : f32
    %55 = vector.broadcast %cst_20 : f32 to vector<8x128xf32>
    %56 = arith.maximumf %54, %55 : vector<8x128xf32>
    %c1 = arith.constant 1 : index
    %c0_21 = arith.constant 0 : index
    %c0_22 = arith.constant 0 : index
    %57 = vector.load %arg3[%c1, %c0_21, %c0_22] : memref<3x128x128xf32, #tpu.memory_space<vmem>>, vector<1x128x128xf32>
    %58 = vector.shape_cast %57 : vector<1x128x128xf32> to vector<128x128xf32>
    %59 = vector.extract_strided_slice %0 {offsets = [2, 0], sizes = [1, 128], strides = [1, 1]} : vector<8x128xf32> to vector<1x128xf32>
    %60 = vector.extract_strided_slice %0 {offsets = [6, 0], sizes = [1, 128], strides = [1, 1]} : vector<8x128xf32> to vector<1x128xf32>
    %cst_23 = arith.constant dense<0.000000e+00> : vector<8x128xf32>
    %61 = tpu.matmul %56, %58, %cst_23 {dimension_numbers = #tpu.dot_dimension_numbers<[1], [0], [0], [1], [0, 0, 1, 1], [], []>} : vector<8x128xf32>, vector<128x128xf32>, vector<8x128xf32> -> vector<8x128xf32>
    %cst_24 = arith.constant dense<0.000000e+00> : vector<128xf32>
    %62 = vector.multi_reduction <add>, %61, %cst_24 [0] : vector<8x128xf32> to vector<128xf32>
    %63 = vector.shape_cast %62 : vector<128xf32> to vector<1x128xf32>
    %cst_25 = arith.constant 8.000000e+00 : f32
    %64 = vector.broadcast %cst_25 : f32 to vector<1x128xf32>
    %65 = arith.divf %63, %64 : vector<1x128xf32>
    %66 = arith.mulf %61, %61 : vector<8x128xf32>
    %cst_26 = arith.constant dense<0.000000e+00> : vector<128xf32>
    %67 = vector.multi_reduction <add>, %66, %cst_26 [0] : vector<8x128xf32> to vector<128xf32>
    %68 = vector.shape_cast %67 : vector<128xf32> to vector<1x128xf32>
    %cst_27 = arith.constant 8.000000e+00 : f32
    %69 = vector.broadcast %cst_27 : f32 to vector<1x128xf32>
    %70 = arith.divf %68, %69 : vector<1x128xf32>
    %71 = arith.mulf %65, %65 : vector<1x128xf32>
    %72 = arith.subf %70, %71 : vector<1x128xf32>
    %cst_28 = arith.constant 9.99999974E-5 : f32
    %73 = vector.broadcast %cst_28 : f32 to vector<1x128xf32>
    %74 = arith.addf %72, %73 : vector<1x128xf32>
    %75 = math.rsqrt %74 : vector<1x128xf32>
    %76 = arith.mulf %59, %75 : vector<1x128xf32>
    %77 = arith.mulf %65, %76 : vector<1x128xf32>
    %78 = arith.subf %60, %77 : vector<1x128xf32>
    %79 = vector.broadcast %76 : vector<1x128xf32> to vector<8x128xf32>
    %80 = arith.mulf %61, %79 : vector<8x128xf32>
    %81 = vector.broadcast %78 : vector<1x128xf32> to vector<8x128xf32>
    %82 = arith.addf %80, %81 : vector<8x128xf32>
    %cst_29 = arith.constant 0.000000e+00 : f32
    %83 = vector.broadcast %cst_29 : f32 to vector<8x128xf32>
    %84 = arith.maximumf %82, %83 : vector<8x128xf32>
    %c2 = arith.constant 2 : index
    %c0_30 = arith.constant 0 : index
    %c0_31 = arith.constant 0 : index
    %85 = vector.load %arg3[%c2, %c0_30, %c0_31] : memref<3x128x128xf32, #tpu.memory_space<vmem>>, vector<1x128x128xf32>
    %86 = vector.shape_cast %85 : vector<1x128x128xf32> to vector<128x128xf32>
    %87 = vector.extract_strided_slice %0 {offsets = [3, 0], sizes = [1, 128], strides = [1, 1]} : vector<8x128xf32> to vector<1x128xf32>
    %88 = vector.extract_strided_slice %0 {offsets = [7, 0], sizes = [1, 128], strides = [1, 1]} : vector<8x128xf32> to vector<1x128xf32>
    %cst_32 = arith.constant dense<0.000000e+00> : vector<8x128xf32>
    %89 = tpu.matmul %84, %86, %cst_32 {dimension_numbers = #tpu.dot_dimension_numbers<[1], [0], [0], [1], [0, 0, 1, 1], [], []>} : vector<8x128xf32>, vector<128x128xf32>, vector<8x128xf32> -> vector<8x128xf32>
    %cst_33 = arith.constant dense<0.000000e+00> : vector<128xf32>
    %90 = vector.multi_reduction <add>, %89, %cst_33 [0] : vector<8x128xf32> to vector<128xf32>
    %91 = vector.shape_cast %90 : vector<128xf32> to vector<1x128xf32>
    %cst_34 = arith.constant 8.000000e+00 : f32
    %92 = vector.broadcast %cst_34 : f32 to vector<1x128xf32>
    %93 = arith.divf %91, %92 : vector<1x128xf32>
    %94 = arith.mulf %89, %89 : vector<8x128xf32>
    %cst_35 = arith.constant dense<0.000000e+00> : vector<128xf32>
    %95 = vector.multi_reduction <add>, %94, %cst_35 [0] : vector<8x128xf32> to vector<128xf32>
    %96 = vector.shape_cast %95 : vector<128xf32> to vector<1x128xf32>
    %cst_36 = arith.constant 8.000000e+00 : f32
    %97 = vector.broadcast %cst_36 : f32 to vector<1x128xf32>
    %98 = arith.divf %96, %97 : vector<1x128xf32>
    %99 = arith.mulf %93, %93 : vector<1x128xf32>
    %100 = arith.subf %98, %99 : vector<1x128xf32>
    %cst_37 = arith.constant 9.99999974E-5 : f32
    %101 = vector.broadcast %cst_37 : f32 to vector<1x128xf32>
    %102 = arith.addf %100, %101 : vector<1x128xf32>
    %103 = math.rsqrt %102 : vector<1x128xf32>
    %104 = arith.mulf %87, %103 : vector<1x128xf32>
    %105 = arith.mulf %93, %104 : vector<1x128xf32>
    %106 = arith.subf %88, %105 : vector<1x128xf32>
    %107 = vector.broadcast %104 : vector<1x128xf32> to vector<8x128xf32>
    %108 = arith.mulf %89, %107 : vector<8x128xf32>
    %109 = vector.broadcast %106 : vector<1x128xf32> to vector<8x128xf32>
    %110 = arith.addf %108, %109 : vector<8x128xf32>
    %c0_38 = arith.constant 0 : index
    %c0_39 = arith.constant 0 : index
    %111 = vector.load %arg5[%c0_38, %c0_39] : memref<8x128xf32, #tpu.memory_space<vmem>>, vector<8x128xf32>
    tpu.vector_store %arg5[%c0_38, %c0_39], %110 {strides = array<i32>} : memref<8x128xf32, #tpu.memory_space<vmem>>, vector<8x128xf32>,
    return
  }
  func.func @transform_0(%arg0: i32) -> (i32, i32) {
    %c0_i32 = arith.constant 0 : i32
    %c0_i32_0 = arith.constant 0 : i32
    %c0_i32_1 = arith.constant 0 : i32
    return %c0_i32, %c0_i32_0 : i32, i32
  }
  func.func @transform_1(%arg0: i32) -> (i32, i32) {
    %c0_i32 = arith.constant 0 : i32
    %c0_i32_0 = arith.constant 0 : i32
    %c0_i32_1 = arith.constant 0 : i32
    return %c0_i32, %c0_i32_0 : i32, i32
  }
  func.func @transform_2(%arg0: i32) -> (i32, i32, i32) {
    %c0_i32 = arith.constant 0 : i32
    %c0_i32_0 = arith.constant 0 : i32
    %c0_i32_1 = arith.constant 0 : i32
    %c0_i32_2 = arith.constant 0 : i32
    return %c0_i32, %c0_i32_0, %c0_i32_1 : i32, i32, i32
  }
  func.func @transform_3(%arg0: i32) -> (i32, i32) {
    %c0_i32 = arith.constant 0 : i32
    %c0_i32_0 = arith.constant 0 : i32
    %c0_i32_1 = arith.constant 0 : i32
    return %c0_i32, %c0_i32_0 : i32, i32
  }
  func.func @transform_4(%arg0: i32) -> (i32, i32) {
    %c0_i32 = arith.constant 0 : i32
    %c0_i32_0 = arith.constant 0 : i32
    %c0_i32_1 = arith.constant 0 : i32
    return %c0_i32, %c0_i32_0 : i32, i32
  }
}

</mosaic_0001>

<bundles_post_ra>
// kernel: tpu_custom_call.1
= control target key start
LH: loop header
LB: loop body
LE: loop exit
PB: predicated region body
PF: predicated region fallthrough
CT: control target
= control target key end

     0   :  { %9 = vsyncpa [#allocation3], 0  ;;  %s1018_s0 = inlined_call_operand.hbm [shape: f32[8,64], index: 0, kind: input, shape index: {}]   ;;  %s1019_s1 = inlined_call_operand.hbm [shape: f32[64,128], index: 1, kind: input, shape index: {}]   ;;  %s1020_s2 = inlined_call_operand.hbm [shape: f32[3,128,128], index: 2, kind: input, shape index: {}]   ;;  %s1021_s3 = inlined_call_operand.hbm [shape: f32[8,128], index: 3, kind: input, shape index: {}]   ;;  %s1022_s4 = inlined_call_operand.hbm [shape: f32[8,128], index: 4, kind: output, shape index: {}]  }
   0x1   :  { %10 = vsyncpa [#allocation6], 0 }
   0x2   :  { %11 = vsyncpa [#allocation9], 0 }
   0x3   :  { %12 = vsyncpa [#allocation4], 0  ;;  %s885_s15 = smov [#allocation5]  }
   0x4   :  { %s28_s16 = sshll.u32 %s885_s15, 4  ;;  %s29_s16 = int_to_ptr.vmem [resolvable:$true] %s28_s16 }
   0x5   :  { %s785_s17 = scalar_lea.vmem %s29_s16, 1024  ;;  %p790_p1 = scmp.lt.s32.totalorder %s29_s16, %s29_s16 }
   0x6   :  { %p786_p0 = scmp.ne.s32.totalorder %s29_s16, %s785_s17  ;;  %p791_p2 = scmp.lt.s32.totalorder %s785_s17, %s785_s17 }
   0x8   :  { %p792_p3 = por %p791_p2, %p790_p1 }
   0xa   :  { %p793_p4 = pnand %p792_p3, %p786_p0 }
   0xc   :  { %796 = shalt.err (!%p793_p4)
}
   0xd   :  { %s886_s18 = smov 128   ;;  %s887_s19 = smov 8  }
   0xe   :  { %34 = dma.hbm_to_vmem [thread:$0]  %s1019_s1, 1024, %s29_s16, [#allocation6], %s886_s18, %s886_s18, %s887_s19  }
   0xf   :  { %s888_s22 = smov [#allocation2]   ;;  %s889_s24 = smov [#allocation7]  }
  0x10   :  { %s19_s23 = sshll.u32 %s888_s22, 4  ;;  %s40_s25 = sshll.u32 %s889_s24, 4  ;;  %s20_s23 = int_to_ptr.vmem [resolvable:$true] %s19_s23  ;;  %s41_s25 = int_to_ptr.vmem [resolvable:$true] %s40_s25 }
  0x11   :  { %s805_s26 = scalar_lea.vmem %s20_s23, 128  ;;  %p810_p6 = scmp.lt.s32.totalorder %s20_s23, %s20_s23 }
  0x12   :  { %p806_p5 = scmp.ne.s32.totalorder %s20_s23, %s805_s26  ;;  %p811_p7 = scmp.lt.s32.totalorder %s805_s26, %s805_s26 }
  0x14   :  { %p812_p8 = por %p811_p7, %p810_p6 }
  0x16   :  { %p813_p9 = pnand %p812_p8, %p806_p5 }
  0x18   :  { %816 = shalt.err (!%p813_p9)
}
  0x19   :  { %22 = dma.hbm_to_vmem [thread:$0]  %s1018_s0, 128, %s20_s23, [#allocation3]  }
  0x1a   :  { %s825_s29 = scalar_lea.vmem %s41_s25, 6144  ;;  %p830_p11 = scmp.lt.s32.totalorder %s41_s25, %s41_s25 }
  0x1b   :  { %p826_p10 = scmp.ne.s32.totalorder %s41_s25, %s825_s29  ;;  %p831_p12 = scmp.lt.s32.totalorder %s825_s29, %s825_s29 }
  0x1d   :  { %p832_p13 = por %p831_p12, %p830_p11 }
  0x1f   :  { %p833_p0 = pnand %p832_p13, %p826_p10 }
  0x21   :  { %836 = shalt.err (!%p833_p0)
}
  0x22   :  { %46 = dma.hbm_to_vmem [thread:$0]  %s1020_s2, 6144, %s41_s25, [#allocation6], %s886_s18, %s886_s18, %s887_s19  }
  0x23   :  { %s890_s5 = smov [#allocation8]  }
  0x24   :  { %s53_s6 = sshll.u32 %s890_s5, 4  ;;  %s54_s6 = int_to_ptr.vmem [resolvable:$true] %s53_s6 }
  0x25   :  { %s845_s7 = scalar_lea.vmem %s54_s6, 128  ;;  %p850_p2 = scmp.lt.s32.totalorder %s54_s6, %s54_s6 }
  0x26   :  { %p846_p1 = scmp.ne.s32.totalorder %s54_s6, %s845_s7  ;;  %p851_p3 = scmp.lt.s32.totalorder %s845_s7, %s845_s7 }
  0x28   :  { %p852_p4 = por %p851_p3, %p850_p2 }
  0x2a   :  { %p853_p5 = pnand %p852_p4, %p846_p1 }
  0x2c   :  { %856 = shalt.err (!%p853_p5)
}
  0x2d   :  { %56 = dma.hbm_to_vmem [thread:$0]  %s1021_s3, 128, %s54_s6, [#allocation9]  }
  0x2e   :  { %877 = dma.done.wait [#allocation3], 128  }
  0x2f   :  { %878 = vsyncadd [#allocation3], 4294967168 }
  0x30   :  { %879 = dma.done.wait [#allocation6], 7168  }
  0x31   :  { %880 = vsyncadd [#allocation6], 4294960128 }
  0x32   :  { %881 = dma.done.wait [#allocation9], 128  }
  0x33   :  { %882 = vsyncadd [#allocation9], 4294967168  ;;  %v891_v0 = vmov 0.0   ;;  %vm892_vm0 = vmmov 0   ;;  %v78_v1 = vld [vmem:[#allocation5 + $0x38] sm:$0xff]  ;;  %v77_v2 = vld [vmem:[#allocation5 + $0x30] sm:$0xff]  ;;  %v179_v46 = vlaneseq }
  0x34   :  { %636 = vmatprep.subr.mxu0 %v891_v0  ;;  %652 = vmatprep.mubr.msk.f32.mxu0 %vm892_vm0, %v891_v0  ;;  %v76_v3 = vld [vmem:[#allocation5 + $0x28] sm:$0xff]  ;;  %v75_v4 = vld [vmem:[#allocation5 + $0x20] sm:$0xff]  ;;  %v74_v5 = vld [vmem:[#allocation5 + $0x18] sm:$0xff]  ;;  %vm79_vm1 = vcmask 523264   ;;  %s893_s2 = smov [#allocation10]  }
  0x35   :  { %655 = vmatprep.subr.mxu1 %v891_v0  ;;  %687 = vmatprep.mubr.msk.f32.mxu1 %vm892_vm0, %v891_v0  ;;  %v73_v6 = vld [vmem:[#allocation5 + $0x10] sm:$0xff]  ;;  %v72_v7 = vld [vmem:[#allocation5 + $0x8] sm:$0xff]  ;;  %v71_v8 = vld [vmem:[#allocation5] sm:$0xff]  ;;  %v963_v47 = vshrl.u32 %v179_v46, 7  ;;  %s564_s3 = sshll.u32 %s893_s2, 4  ;;  %s565_s3 = int_to_ptr.vmem [resolvable:$true] %s564_s3 }
  0x36   :  { %637 = vmatpush3.msra.mxu0 %v78_v1  ;;  %v70_v9 = vld [vmem:[#allocation2] sm:$0xff]  ;;  %v204_v11 = vld [vmem:[#allocation7 + $0x70] sm:$0xff]  ;;  %v203_v12 = vld [vmem:[#allocation7 + $0x68] sm:$0xff]  ;;  %s857_s9 = scalar_lea.vmem %s565_s3, 128  ;;  %p862_p7 = scmp.lt.s32.totalorder %s565_s3, %s565_s3 }
  0x37   :  { %638 = vmatprep.subr.mxu0 %v891_v0  ;;  %v205_v10 = vld [vmem:[#allocation7 + $0x78] sm:$0xff]  ;;  %v202_v13 = vld [vmem:[#allocation7 + $0x60] sm:$0xff]  ;;  %v200_v15 = vld [vmem:[#allocation7 + $0x50] sm:$0xff]  ;;  %v181_v51 = vsub.s32 0, %v963_v47  ;;  %v186_v55 = vsub.s32 4, %v963_v47  ;;  %p858_p6 = scmp.ne.s32.totalorder %s565_s3, %s857_s9  ;;  %p863_p8 = scmp.lt.s32.totalorder %s857_s9, %s857_s9 }
  0x38   :  { %639 = vmatpush3.msra.mxu0 %v77_v2  ;;  %656 = vmatpush3.msra.mxu1 %v205_v10  ;;  %v201_v14 = vld [vmem:[#allocation7 + $0x58] sm:$0xff]  ;;  %v199_v16 = vld [vmem:[#allocation7 + $0x48] sm:$0xff]  ;;  %v198_v17 = vld [vmem:[#allocation7 + $0x40] sm:$0xff] }
  0x39   :  { %640 = vmatprep.subr.mxu0 %v891_v0  ;;  %657 = vmatprep.subr.mxu1 %v891_v0  ;;  %v197_v18 = vld [vmem:[#allocation7 + $0x38] sm:$0xff]  ;;  %v196_v19 = vld [vmem:[#allocation7 + $0x30] sm:$0xff]  ;;  %v195_v20 = vld [vmem:[#allocation7 + $0x28] sm:$0xff]  ;;  %p864_p9 = por %p863_p8, %p862_p7 }
  0x3a   :  { %641 = vmatpush3.msra.mxu0 %v76_v3  ;;  %658 = vmatpush3.msra.mxu1 %v204_v11  ;;  %v194_v21 = vld [vmem:[#allocation7 + $0x20] sm:$0xff]  ;;  %v193_v22 = vld [vmem:[#allocation7 + $0x18] sm:$0xff]  ;;  %v192_v23 = vld [vmem:[#allocation7 + $0x10] sm:$0xff] }
  0x3b   :  { %642 = vmatprep.subr.mxu0 %v891_v0  ;;  %659 = vmatprep.subr.mxu1 %v891_v0  ;;  %v191_v24 = vld [vmem:[#allocation7 + $0x8] sm:$0xff]  ;;  %v190_v25 = vld [vmem:[#allocation7] sm:$0xff]  ;;  %v328_v61 = vld [vmem:[#allocation7 + $0xf8] sm:$0xff]  ;;  %p865_p10 = pnand %p864_p9, %p858_p6 }
  0x3c   :  { %643 = vmatpush3.msra.mxu0 %v75_v4  ;;  %660 = vmatpush3.msra.mxu1 %v203_v12  ;;  %v965_v48 = vld [vmem:[#allocation8] sm:$0xff]  ;;  %v327_v62 = vld [vmem:[#allocation7 + $0xf0] sm:$0xff]  ;;  %v326_v63 = vld [vmem:[#allocation7 + $0xe8] sm:$0xff] }
  0x3d   :  { %644 = vmatprep.subr.mxu0 %v891_v0  ;;  %661 = vmatprep.subr.mxu1 %v891_v0  ;;  %v325_v1 = vld [vmem:[#allocation7 + $0xe0] sm:$0xff]  ;;  %v324_v2 = vld [vmem:[#allocation7 + $0xd8] sm:$0xff]  ;;  %v323_v3 = vld [vmem:[#allocation7 + $0xd0] sm:$0xff] }
  0x3e   :  { %645 = vmatpush3.msra.mxu0 %v74_v5  ;;  %662 = vmatpush3.msra.mxu1 %v202_v13  ;;  %v322_v4 = vld [vmem:[#allocation7 + $0xc8] sm:$0xff]  ;;  %v321_v5 = vld [vmem:[#allocation7 + $0xc0] sm:$0xff]  ;;  %v316_v10 = vld [vmem:[#allocation7 + $0x98] sm:$0xff] }
  0x3f   :  { %646 = vmatprep.subr.mxu0 %v891_v0  ;;  %663 = vmatprep.subr.mxu1 %v891_v0  ;;  %v315_v11 = vld [vmem:[#allocation7 + $0x90] sm:$0xff]  ;;  %v314_v12 = vld [vmem:[#allocation7 + $0x88] sm:$0xff]  ;;  %v313_v13 = vld [vmem:[#allocation7 + $0x80] sm:$0xff] }
  0x40   :  { %647 = vmatpush3.msra.mxu0 %v73_v6  ;;  %664 = vmatpush3.msra.mxu1 %v201_v14  ;;  %v320_v6 = vld [vmem:[#allocation7 + $0xb8] sm:$0xff] }
  0x41   :  { %648 = vmatprep.subr.mxu0 %v891_v0  ;;  %665 = vmatprep.subr.mxu1 %v891_v0  ;;  %v451_v46 = vld [vmem:[#allocation7 + $0x178] sm:$0xff] }
  0x42   :  { %649 = vmatpush3.msra.mxu0 %v72_v7  ;;  %666 = vmatpush3.msra.mxu1 %v200_v15  ;;  %v319_v7 = vld [vmem:[#allocation7 + $0xb0] sm:$0xff] }
  0x43   :  { %650 = vmatprep.subr.mxu0 %v891_v0  ;;  %667 = vmatprep.subr.mxu1 %v891_v0 }
  0x44   :  { %651 = vmatpush3.msra.mxu0 %v71_v8  ;;  %668 = vmatpush3.msra.mxu1 %v199_v16  ;;  %v318_v8 = vld [vmem:[#allocation7 + $0xa8] sm:$0xff] }
  0x45   :  { %653 = vmatmul.mubr.msk.f32.vlgmr.msra.gmra.mxu0 %vm79_vm1, %v70_v9  ;;  %690 = vmatprep.subr.mxu0 %v891_v0  ;;  %v317_v9 = vld [vmem:[#allocation7 + $0xa0] sm:$0xff] }
  0x46   :  { %722 = vmatprep.mubr.msk.f32.mxu0 %vm892_vm0, %v891_v0  ;;  %669 = vmatprep.subr.mxu1 %v891_v0 }
  0x47   :  { %670 = vmatpush3.msra.mxu1 %v198_v17  ;;  %691 = vmatpush3.msra.mxu0 %v328_v61  ;;  %v438_v61 = vld [vmem:[#allocation7 + $0x110] sm:$0xff] }
  0x48   :  { %671 = vmatprep.subr.mxu1 %v891_v0  ;;  %692 = vmatprep.subr.mxu0 %v891_v0 }
  0x49   :  { %672 = vmatpush3.msra.mxu1 %v197_v18  ;;  %693 = vmatpush3.msra.mxu0 %v327_v62  ;;  %v437_v62 = vld [vmem:[#allocation7 + $0x108] sm:$0xff] }
  0x4a   :  { %673 = vmatprep.subr.mxu1 %v891_v0  ;;  %694 = vmatprep.subr.mxu0 %v891_v0 }
  0x4b   :  { %674 = vmatpush3.msra.mxu1 %v196_v19  ;;  %695 = vmatpush3.msra.mxu0 %v326_v63  ;;  %v436_v63 = vld [vmem:[#allocation7 + $0x100] sm:$0xff] }
  0x4c   :  { %675 = vmatprep.subr.mxu1 %v891_v0  ;;  %696 = vmatprep.subr.mxu0 %v891_v0 }
  0x4d   :  { %676 = vmatpush3.msra.mxu1 %v195_v20  ;;  %697 = vmatpush3.msra.mxu0 %v325_v1 }
  0x4e   :  { %677 = vmatprep.subr.mxu1 %v891_v0  ;;  %698 = vmatprep.subr.mxu0 %v891_v0 }
  0x4f   :  { %678 = vmatpush3.msra.mxu1 %v194_v21  ;;  %699 = vmatpush3.msra.mxu0 %v324_v2 }
  0x50   :  { %679 = vmatprep.subr.mxu1 %v891_v0  ;;  %700 = vmatprep.subr.mxu0 %v891_v0 }
  0x51   :  { %680 = vmatpush3.msra.mxu1 %v193_v22  ;;  %701 = vmatpush3.msra.mxu0 %v323_v3 }
  0x52   :  { %681 = vmatprep.subr.mxu1 %v891_v0  ;;  %702 = vmatprep.subr.mxu0 %v891_v0 }
  0x53   :  { %682 = vmatpush3.msra.mxu1 %v192_v23  ;;  %703 = vmatpush3.msra.mxu0 %v322_v4 }
  0x54   :  { %683 = vmatprep.subr.mxu1 %v891_v0  ;;  %704 = vmatprep.subr.mxu0 %v891_v0 }
  0x55   :  { %684 = vmatpush3.msra.mxu1 %v191_v24  ;;  %705 = vmatpush3.msra.mxu0 %v321_v5 }
  0x56   :  { %685 = vmatprep.subr.mxu1 %v891_v0  ;;  %706 = vmatprep.subr.mxu0 %v891_v0 }
  0x57   :  { %686 = vmatpush3.msra.mxu1 %v190_v25  ;;  %707 = vmatpush3.msra.mxu0 %v320_v6 }
  0x58   :  { %725 = vmatprep.subr.mxu1 %v891_v0  ;;  %708 = vmatprep.subr.mxu0 %v891_v0 }
  0x59   :  { %709 = vmatpush3.msra.mxu0 %v319_v7 }
  0x5a   :  { %710 = vmatprep.subr.mxu0 %v891_v0 }
  0x5b   :  { %711 = vmatpush3.msra.mxu0 %v318_v8 }
  0x5c   :  { %712 = vmatprep.subr.mxu0 %v891_v0 }
  0x5d   :  { %713 = vmatpush3.msra.mxu0 %v317_v9 }
  0x5e   :  { %714 = vmatprep.subr.mxu0 %v891_v0 }
  0x5f   :  { %715 = vmatpush3.msra.mxu0 %v316_v10 }
  0x60   :  { %716 = vmatprep.subr.mxu0 %v891_v0 }
  0x61   :  { %717 = vmatpush3.msra.mxu0 %v315_v11 }
  0x62   :  { %718 = vmatprep.subr.mxu0 %v891_v0 }
  0x63   :  { %719 = vmatpush3.msra.mxu0 %v314_v12 }
  0x64   :  { %720 = vmatprep.subr.mxu0 %v891_v0 }
  0x65   :  { %721 = vmatpush3.msra.mxu0 %v313_v13 }
 0x105   :  { %v149_v26 = vpop.f32.mrf.mxu0 }
 0x106   :  { %v153_v27 = vrot.slane %v149_v26, 4  ;;  %v161_v28 = vmul.f32 %v149_v26, %v149_v26 }
 0x107   :  { %v654_v29 = vpop.f32.mrf.mxu0 }
 0x108   :  { %v154_v30 = vadd.f32 %v153_v27, %v149_v26  ;;  %v162_v31 = vrot.slane %v161_v28, 4 }
 0x10a   :  { %v155_v32 = vrot.slane %v154_v30, 2  ;;  %v163_v33 = vadd.f32 %v162_v31, %v161_v28 }
 0x10c   :  { %v156_v34 = vadd.f32 %v155_v32, %v154_v30  ;;  %v164_v35 = vrot.slane %v163_v33, 2 }
 0x10e   :  { %v157_v36 = vrot.slane %v156_v34, 1  ;;  %v165_v37 = vadd.f32 %v164_v35, %v163_v33 }
 0x110   :  { %v158_v38 = vadd.f32 %v157_v36, %v156_v34  ;;  %v166_v39 = vrot.slane %v165_v37, 1  ;;  %v303_v36 = vsub.s32 1, %v963_v47 }
 0x112   :  { %v160_v40 = vmul.f32 0.125, %v158_v38  ;;  %v167_v41 = vadd.f32 %v166_v39, %v165_v37 }
 0x114   :  { %v168_v42 = vmul.f32 0.125, %v167_v41  ;;  %v169_v43 = vmul.f32 %v160_v40, %v160_v40 }
 0x116   :  { %v170_v44 = vsub.f32 %v168_v42, %v169_v43 }
 0x118   :  { %v171_v45 = vadd.f32 0.0001, %v170_v44 }
 0x11a   :  { %769 = vrsqrt.f32 %v171_v45 }
 0x127   :  { %v770_v49 = vpop.eup %769 }
 0x128   :  { %v173_v50 = vmul.f32 %v770_v49, %v965_v48  ;;  %v450_v49 = vld [vmem:[#allocation7 + $0x170] sm:$0xff] }
 0x12a   :  { %v174_v52 = vmul.f32 %v173_v50, %v160_v40  ;;  %v182_v53 = vrot.slane %v173_v50, %v181_v51  ;;  %v308_v40 = vsub.s32 5, %v963_v47  ;;  %v449_v50 = vld [vmem:[#allocation7 + $0x168] sm:$0xff]  ;;  %v448_v51 = vld [vmem:[#allocation7 + $0x160] sm:$0xff] }
 0x12c   :  { %v176_v54 = vrot.slane %v174_v52, 4  ;;  %v183_v57 = vmul.f32 %v182_v53, %v149_v26  ;;  %v447_v52 = vld [vmem:[#allocation7 + $0x158] sm:$0xff]  ;;  %v446_v53 = vld [vmem:[#allocation7 + $0x150] sm:$0xff] }
 0x12e   :  { %v178_v56 = vsub.f32 %v965_v48, %v176_v54  ;;  %v445_v54 = vld [vmem:[#allocation7 + $0x148] sm:$0xff] }
 0x130   :  { %v187_v58 = vrot.slane %v178_v56, %v186_v55  ;;  %v444_v55 = vld [vmem:[#allocation7 + $0x140] sm:$0xff]  ;;  %v443_v56 = vld [vmem:[#allocation7 + $0x138] sm:$0xff] }
 0x132   :  { %v188_v59 = vadd.f32 %v187_v58, %v183_v57  ;;  %v442_v57 = vld [vmem:[#allocation7 + $0x130] sm:$0xff]  ;;  %v441_v58 = vld [vmem:[#allocation7 + $0x128] sm:$0xff] }
 0x134   :  { %v189_v60 = vmax.f32 %v188_v59, 0.0  ;;  %v440_v59 = vld [vmem:[#allocation7 + $0x120] sm:$0xff] }
 0x136   :  { %688 = vmatmul.mubr.f32.vlgmr.msra.gmra.mxu1 %v189_v60  ;;  %v439_v60 = vld [vmem:[#allocation7 + $0x118] sm:$0xff] }
 0x137   :  { %757 = vmatprep.mubr.msk.f32.mxu1 %vm892_vm0, %v891_v0  ;;  %726 = vmatpush3.msra.mxu1 %v451_v46 }
 0x138   :  { %727 = vmatprep.subr.mxu1 %v891_v0 }
 0x139   :  { %728 = vmatpush3.msra.mxu1 %v450_v49 }
 0x13a   :  { %729 = vmatprep.subr.mxu1 %v891_v0 }
 0x13b   :  { %730 = vmatpush3.msra.mxu1 %v449_v50 }
 0x13c   :  { %731 = vmatprep.subr.mxu1 %v891_v0 }
 0x13d   :  { %732 = vmatpush3.msra.mxu1 %v448_v51 }
 0x13e   :  { %733 = vmatprep.subr.mxu1 %v891_v0 }
 0x13f   :  { %734 = vmatpush3.msra.mxu1 %v447_v52 }
 0x140   :  { %735 = vmatprep.subr.mxu1 %v891_v0 }
 0x141   :  { %736 = vmatpush3.msra.mxu1 %v446_v53 }
 0x142   :  { %737 = vmatprep.subr.mxu1 %v891_v0 }
 0x143   :  { %738 = vmatpush3.msra.mxu1 %v445_v54 }
 0x144   :  { %739 = vmatprep.subr.mxu1 %v891_v0 }
 0x145   :  { %740 = vmatpush3.msra.mxu1 %v444_v55 }
 0x146   :  { %741 = vmatprep.subr.mxu1 %v891_v0 }
 0x147   :  { %742 = vmatpush3.msra.mxu1 %v443_v56  ;;  %v549_v56 = vsub.s32 3, %v963_v47 }
 0x148   :  { %743 = vmatprep.subr.mxu1 %v891_v0 }
 0x149   :  { %744 = vmatpush3.msra.mxu1 %v442_v57 }
 0x14a   :  { %745 = vmatprep.subr.mxu1 %v891_v0 }
 0x14b   :  { %746 = vmatpush3.msra.mxu1 %v441_v58 }
 0x14c   :  { %747 = vmatprep.subr.mxu1 %v891_v0 }
 0x14d   :  { %748 = vmatpush3.msra.mxu1 %v440_v59 }
 0x14e   :  { %749 = vmatprep.subr.mxu1 %v891_v0 }
 0x14f   :  { %750 = vmatpush3.msra.mxu1 %v439_v60  ;;  %v554_v60 = vsub.s32 7, %v963_v47 }
 0x150   :  { %751 = vmatprep.subr.mxu1 %v891_v0 }
 0x151   :  { %752 = vmatpush3.msra.mxu1 %v438_v61 }
 0x152   :  { %753 = vmatprep.subr.mxu1 %v891_v0 }
 0x153   :  { %754 = vmatpush3.msra.mxu1 %v437_v62 }
 0x154   :  { %755 = vmatprep.subr.mxu1 %v891_v0 }
 0x155   :  { %756 = vmatpush3.msra.mxu1 %v436_v63 }
 0x1f6   :  { %v272_v14 = vpop.f32.mrf.mxu1 }
 0x1f7   :  { %v276_v15 = vrot.slane %v272_v14, 4  ;;  %v283_v16 = vmul.f32 %v272_v14, %v272_v14 }
 0x1f8   :  { %v689_v17 = vpop.f32.mrf.mxu1 }
 0x1f9   :  { %v277_v18 = vadd.f32 %v276_v15, %v272_v14  ;;  %v284_v19 = vrot.slane %v283_v16, 4 }
 0x1fb   :  { %v278_v20 = vrot.slane %v277_v18, 2  ;;  %v285_v21 = vadd.f32 %v284_v19, %v283_v16 }
 0x1fd   :  { %v279_v22 = vadd.f32 %v278_v20, %v277_v18  ;;  %v286_v23 = vrot.slane %v285_v21, 2 }
 0x1ff   :  { %v280_v24 = vrot.slane %v279_v22, 1  ;;  %v287_v25 = vadd.f32 %v286_v23, %v285_v21 }
 0x201   :  { %v281_v26 = vadd.f32 %v280_v24, %v279_v22  ;;  %v288_v27 = vrot.slane %v287_v25, 1  ;;  %v426_v22 = vsub.s32 2, %v963_v47 }
 0x203   :  { %v282_v28 = vmul.f32 0.125, %v281_v26  ;;  %v289_v29 = vadd.f32 %v288_v27, %v287_v25  ;;  %v431_v26 = vsub.s32 6, %v963_v47 }
 0x205   :  { %v290_v30 = vmul.f32 0.125, %v289_v29  ;;  %v291_v31 = vmul.f32 %v282_v28, %v282_v28 }
 0x207   :  { %v292_v32 = vsub.f32 %v290_v30, %v291_v31 }
 0x209   :  { %v293_v33 = vadd.f32 0.0001, %v292_v32 }
 0x20b   :  { %771 = vrsqrt.f32 %v293_v33 }
 0x218   :  { %v772_v34 = vpop.eup %771 }
 0x219   :  { %v295_v35 = vmul.f32 %v772_v34, %v965_v48 }
 0x21b   :  { %v296_v37 = vmul.f32 %v295_v35, %v282_v28  ;;  %v304_v39 = vrot.slane %v295_v35, %v303_v36 }
 0x21d   :  { %v298_v38 = vrot.slane %v296_v37, 4  ;;  %v305_v42 = vmul.f32 %v304_v39, %v272_v14 }
 0x21f   :  { %v300_v41 = vsub.f32 %v965_v48, %v298_v38 }
 0x221   :  { %v309_v43 = vrot.slane %v300_v41, %v308_v40 }
 0x223   :  { %v310_v44 = vadd.f32 %v309_v43, %v305_v42 }
 0x225   :  { %v311_v45 = vmax.f32 %v310_v44, 0.0 }
 0x227   :  { %723 = vmatmul.mubr.f32.vlgmr.msra.gmra.mxu0 %v311_v45 }
 0x2e7   :  { %v395_v1 = vpop.f32.mrf.mxu0 }
 0x2e8   :  { %v399_v2 = vrot.slane %v395_v1, 4  ;;  %v406_v3 = vmul.f32 %v395_v1, %v395_v1 }
 0x2e9   :  { %v724_v4 = vpop.f32.mrf.mxu0 }
 0x2ea   :  { %v400_v5 = vadd.f32 %v399_v2, %v395_v1  ;;  %v407_v6 = vrot.slane %v406_v3, 4 }
 0x2ec   :  { %v401_v7 = vrot.slane %v400_v5, 2  ;;  %v408_v8 = vadd.f32 %v407_v6, %v406_v3 }
 0x2ee   :  { %v402_v9 = vadd.f32 %v401_v7, %v400_v5  ;;  %v409_v10 = vrot.slane %v408_v8, 2 }
 0x2f0   :  { %v403_v11 = vrot.slane %v402_v9, 1  ;;  %v410_v12 = vadd.f32 %v409_v10, %v408_v8 }
 0x2f2   :  { %v404_v13 = vadd.f32 %v403_v11, %v402_v9  ;;  %v411_v14 = vrot.slane %v410_v12, 1 }
 0x2f4   :  { %v405_v15 = vmul.f32 0.125, %v404_v13  ;;  %v412_v16 = vadd.f32 %v411_v14, %v410_v12 }
 0x2f6   :  { %v413_v17 = vmul.f32 0.125, %v412_v16  ;;  %v414_v18 = vmul.f32 %v405_v15, %v405_v15 }
 0x2f8   :  { %v415_v0 = vsub.f32 %v413_v17, %v414_v18 }
 0x2fa   :  { %v416_v19 = vadd.f32 0.0001, %v415_v0 }
 0x2fc   :  { %773 = vrsqrt.f32 %v416_v19 }
 0x309   :  { %v774_v20 = vpop.eup %773 }
 0x30a   :  { %v418_v21 = vmul.f32 %v774_v20, %v965_v48 }
 0x30c   :  { %v419_v23 = vmul.f32 %v418_v21, %v405_v15  ;;  %v427_v25 = vrot.slane %v418_v21, %v426_v22 }
 0x30e   :  { %v421_v24 = vrot.slane %v419_v23, 4  ;;  %v428_v28 = vmul.f32 %v427_v25, %v395_v1 }
 0x310   :  { %v423_v27 = vsub.f32 %v965_v48, %v421_v24 }
 0x312   :  { %v432_v29 = vrot.slane %v423_v27, %v431_v26 }
 0x314   :  { %v433_v30 = vadd.f32 %v432_v29, %v428_v28 }
 0x316   :  { %v434_v31 = vmax.f32 %v433_v30, 0.0 }
 0x318   :  { %758 = vmatmul.mubr.f32.vlgmr.msra.gmra.mxu1 %v434_v31 }
 0x3d8   :  { %v518_v32 = vpop.f32.mrf.mxu1 }
 0x3d9   :  { %v522_v33 = vrot.slane %v518_v32, 4  ;;  %v529_v34 = vmul.f32 %v518_v32, %v518_v32 }
 0x3da   :  { %v759_v35 = vpop.f32.mrf.mxu1 }
 0x3db   :  { %v523_v36 = vadd.f32 %v522_v33, %v518_v32  ;;  %v530_v37 = vrot.slane %v529_v34, 4 }
 0x3dd   :  { %v524_v38 = vrot.slane %v523_v36, 2  ;;  %v531_v39 = vadd.f32 %v530_v37, %v529_v34 }
 0x3df   :  { %v525_v40 = vadd.f32 %v524_v38, %v523_v36  ;;  %v532_v41 = vrot.slane %v531_v39, 2 }
 0x3e1   :  { %v526_v42 = vrot.slane %v525_v40, 1  ;;  %v533_v43 = vadd.f32 %v532_v41, %v531_v39 }
 0x3e3   :  { %v527_v44 = vadd.f32 %v526_v42, %v525_v40  ;;  %v534_v45 = vrot.slane %v533_v43, 1 }
 0x3e5   :  { %v528_v46 = vmul.f32 0.125, %v527_v44  ;;  %v535_v49 = vadd.f32 %v534_v45, %v533_v43 }
 0x3e7   :  { %v536_v50 = vmul.f32 0.125, %v535_v49  ;;  %v537_v51 = vmul.f32 %v528_v46, %v528_v46 }
 0x3e9   :  { %v538_v52 = vsub.f32 %v536_v50, %v537_v51 }
 0x3eb   :  { %v539_v53 = vadd.f32 0.0001, %v538_v52 }
 0x3ed   :  { %775 = vrsqrt.f32 %v539_v53 }
 0x3fa   :  { %v776_v54 = vpop.eup %775 }
 0x3fb   :  { %v541_v55 = vmul.f32 %v776_v54, %v965_v48 }
 0x3fd   :  { %v542_v57 = vmul.f32 %v541_v55, %v528_v46  ;;  %v550_v59 = vrot.slane %v541_v55, %v549_v56 }
 0x3ff   :  { %v544_v58 = vrot.slane %v542_v57, 4  ;;  %v551_v62 = vmul.f32 %v550_v59, %v518_v32 }
 0x401   :  { %v546_v61 = vsub.f32 %v965_v48, %v544_v58 }
 0x403   :  { %v555_v63 = vrot.slane %v546_v61, %v554_v60 }
 0x405   :  { %v556_v1 = vadd.f32 %v555_v63, %v551_v62 }
 0x407   :  { %557 = vst [vmem:[#allocation10] sm:$0xff] %v556_v1 }
 0x408   :  { %868 = shalt.err (!%p865_p10)
}
 0x409   :  { %567 = dma.vmem_to_hbm [thread:$0]  %s565_s3, 128, %s1022_s4, [#allocation4]  }
 0x40a   :  { %883 = dma.done.wait [#allocation4], 128  }
 0x40b   :  { %884 = vsyncadd [#allocation4], 4294967168 }
 0x40c   :  { %571 = vsyncpa [#allocation3], 1 }
 0x40d   :  { %572 = vsyncpa [#allocation6], 1 }
 0x40e   :  { %573 = vsyncpa [#allocation9], 1 }
 0x40f   :  { %574 = vsyncpa [#allocation4], 1 }

</bundles_post_ra>
